<compile_context>
chip_gen: v7x
topology: tpu7x:2x2x1
jax: 0.10.0
libtpu: 0.0.40
codegen_flags: <defaults>
</compile_context>

<pallas_src>
import functools
import math

import jax
import jax.numpy as jnp
from jax import lax
from jax.experimental import pallas as pl
from jax.experimental.pallas import tpu as pltpu

COS_SIMI_SCALE = 1.0
LOGIT_SCALE_INIT = 2.6592  # nn.Parameter(torch.ones([]) * 2.6592), requires_grad=False


def _clip_loss_kernel(rna_hbm, atac_ref, logits_ref, loss_ref,
                      rna_vmem, col_max, col_sum, row_acc, diag_acc, cos_acc,
                      dma_sem, *, scale, cos_simi_scale, n_total):
    i = pl.program_id(0)
    nblk = pl.num_programs(0)
    tm = atac_ref.shape[0]

    @pl.when(i == 0)
    def _init():
        # One-time HBM -> VMEM copy of the full rna matrix (single-buffered
        # residency; a BlockSpec resident would be double-buffered).
        cp = pltpu.make_async_copy(rna_hbm, rna_vmem, dma_sem)
        cp.start()
        col_max[...] = jnp.full(col_max.shape, -jnp.inf, dtype=col_max.dtype)
        col_sum[...] = jnp.zeros(col_sum.shape, dtype=col_sum.dtype)
        row_acc[...] = jnp.zeros(row_acc.shape, dtype=row_acc.dtype)
        diag_acc[...] = jnp.zeros(diag_acc.shape, dtype=diag_acc.dtype)
        cos_acc[...] = jnp.zeros(cos_acc.shape, dtype=cos_acc.dtype)
        cp.wait()

    scale_f = jnp.float32(scale)  # exp(logit_scale), compile-time constant

    atac_blk = atac_ref[...]      # (TM, D), native dtype
    rna_all = rna_vmem[...]       # (N, D),  native dtype

    # Row block of logits_per_atac: atac_blk @ rna^T * scale
    # (contract over D, no explicit transpose -> MXU-direct).
    logits = lax.dot_general(
        atac_blk, rna_all,
        dimension_numbers=(((1,), (1,)), ((), ())),
        preferred_element_type=jnp.float32) * scale_f          # (TM, N) f32
    logits_ref[...] = logits.astype(logits_ref.dtype)

    # ---- caption loss: row logsumexp (lane-axis reductions) ----
    m_r = jnp.max(logits, axis=-1, keepdims=True)
    lse_r = m_r + jnp.log(jnp.sum(jnp.exp(logits - m_r), axis=-1, keepdims=True))
    row_acc[...] += jnp.sum(lse_r, keepdims=True)               # (1, 1)

    # ---- atac loss: streaming column logsumexp (online-softmax rescale) ----
    blk_max = jnp.max(logits, axis=0, keepdims=True)            # (1, N) XLU reduce
    new_max = jnp.maximum(col_max[...], blk_max)
    col_sum[...] = (col_sum[...] * jnp.exp(col_max[...] - new_max)
                    + jnp.sum(jnp.exp(logits - new_max), axis=0, keepdims=True))
    col_max[...] = new_max

    # ---- diagonal + cosine similarity (f32 epilogue) ----
    row0 = pl.multiple_of(i * tm, tm)
    rna_f = rna_vmem[pl.ds(row0, tm), :].astype(jnp.float32)    # (TM, D)
    atac_f = atac_blk.astype(jnp.float32)
    dot = jnp.sum(rna_f * atac_f, axis=1, keepdims=True)        # (TM, 1)
    diag_acc[...] += jnp.sum(dot, keepdims=True) * scale_f      # sum of logits[r, r]
    # CosineSimilarity(dim=1, eps=1e-6) via rsqrt on eps^2-clamped squared norms.
    nrr = jnp.sum(rna_f * rna_f, axis=1, keepdims=True)
    naa = jnp.sum(atac_f * atac_f, axis=1, keepdims=True)
    eps2 = jnp.float32(1e-12)                                   # (1e-6)^2
    cos = dot * lax.rsqrt(jnp.maximum(nrr, eps2)) * lax.rsqrt(jnp.maximum(naa, eps2))
    cos_acc[...] += jnp.sum(cos, keepdims=True)

    @pl.when(i == nblk - 1)
    def _finalize():
        inv_n = jnp.float32(1.0 / n_total)
        lse_c = col_max[...] + jnp.log(col_sum[...])            # (1, N)
        caption_loss = (row_acc[...] - diag_acc[...]) * inv_n
        atac_loss = (jnp.sum(lse_c, keepdims=True) - diag_acc[...]) * inv_n
        cos_mean = cos_acc[...] * inv_n
        loss = ((caption_loss + atac_loss) * 0.5
                + (jnp.float32(1.0) - cos_mean) * jnp.float32(cos_simi_scale))
        loss_ref[...] = loss


def _vmem_budget_bytes():
    """Scoped-VMEM budget: ~85% of the chip's physical per-core VMEM."""
    try:
        cap = int(pltpu.get_tpu_info().vmem_capacity_bytes)
    except Exception:
        cap = 64 * 1024 * 1024          # conservative (v7x-sized) fallback
    return min(int(cap * 0.85), 110 * 1024 * 1024)


def _kernel_vmem_bytes(tm, n, d, in_esize, out_esize):
    """Footprint model for the tile picker (double buffers where Pallas does)."""
    return (n * d * in_esize            # resident rna copy (single buffer)
            + 2 * tm * d * in_esize     # streamed atac row blocks (double buffered)
            + 2 * tm * n * out_esize    # logits output row block (double buffered)
            + 3 * tm * n * 4            # live f32 temporaries (logits + exps)
            + 2 * n * 4                 # column logsumexp accumulators
            + (1 << 20))                # slack for Mosaic internal scratch


def _pick_block_rows(n, d, in_esize, out_esize, budget):
    """Largest row tile (multiple of 8, divisor of n, <= 1024) that fits VMEM."""
    if n <= 256:
        return n
    cands = [t for t in range(8, min(n, 1024) + 1, 8) if n % t == 0]
    for tm in sorted(cands, reverse=True):
        if _kernel_vmem_bytes(tm, n, d, in_esize, out_esize) <= budget:
            return tm
    # TODO(synk): if even the smallest tile does not fit, a 2-D column-tiled
    # (flash-style) path is needed; fall back to the smallest legal tile.
    return cands[0] if cands else n


def clip_loss_forward(rna_embeds, atac_embeds,
                      logit_scale=LOGIT_SCALE_INIT,
                      cos_simi_scale=COS_SIMI_SCALE,
                      block_rows=None,
                      logits_dtype=jnp.float32):
    """Returns (loss_scalar, logits_per_atac) just like CLIPLoss.forward."""
    n, d = rna_embeds.shape
    assert atac_embeds.shape == (n, d)

    in_esize = jnp.dtype(rna_embeds.dtype).itemsize
    out_esize = jnp.dtype(logits_dtype).itemsize
    budget = _vmem_budget_bytes()
    tm = block_rows if block_rows is not None else _pick_block_rows(
        n, d, in_esize, out_esize, budget)
    assert n % tm == 0 and (tm == n or tm % 8 == 0), (n, tm)
    num_blocks = n // tm

    # Frozen parameter: bake exp(logit_scale) in as a compile-time constant.
    scale = math.exp(float(logit_scale))

    kernel = functools.partial(_clip_loss_kernel, scale=scale,
                               cos_simi_scale=float(cos_simi_scale), n_total=n)

    logits, loss = pl.pallas_call(
        kernel,
        out_shape=(
            jax.ShapeDtypeStruct((n, n), logits_dtype),
            jax.ShapeDtypeStruct((1, 1), jnp.float32),
        ),
        grid=(num_blocks,),
        in_specs=[
            pl.BlockSpec(memory_space=pl.ANY),             # rna: HBM, copied once
            pl.BlockSpec((tm, d), lambda i: (i, 0)),       # atac: streamed row blocks
        ],
        out_specs=(
            pl.BlockSpec((tm, n), lambda i: (i, 0)),       # logits row block (lane-dense)
            pl.BlockSpec((1, 1), lambda i: (0, 0)),        # scalar loss (resident)
        ),
        scratch_shapes=[
            pltpu.VMEM((n, d), rna_embeds.dtype),          # resident rna (single copy)
            pltpu.VMEM((1, n), jnp.float32),               # running column max
            pltpu.VMEM((1, n), jnp.float32),               # running column sum-exp
            pltpu.VMEM((1, 1), jnp.float32),               # sum(row logsumexp)
            pltpu.VMEM((1, 1), jnp.float32),               # sum(diag logits)
            pltpu.VMEM((1, 1), jnp.float32),               # sum(cosine)
            pltpu.SemaphoreType.DMA,                       # rna copy semaphore
        ],
        compiler_params=pltpu.CompilerParams(
            # Sequential grid: scratch accumulators + one-time rna copy need it.
            dimension_semantics=("arbitrary",),
            vmem_limit_bytes=int(budget),
        ),
    )(rna_embeds, atac_embeds)

    return loss[0, 0], logits


def _reference(rna, atac, logit_scale=LOGIT_SCALE_INIT, cos_simi_scale=COS_SIMI_SCALE):
    """Pure-JAX reference matching the PyTorch semantics, for verification."""
    scale = jnp.exp(jnp.float32(logit_scale))
    logits = atac @ rna.T * scale
    n = logits.shape[0]
    labels = jnp.arange(n)

    def ce(lg):
        lse = jax.nn.logsumexp(lg, axis=1)
        return jnp.mean(lse - lg[jnp.arange(n), labels])

    loss = (ce(logits) + ce(logits.T)) / 2.0
    eps = 1e-6
    cos = jnp.sum(rna * atac, axis=1) / (
        jnp.maximum(jnp.linalg.norm(rna, axis=1), eps)
        * jnp.maximum(jnp.linalg.norm(atac, axis=1), eps)
    )
    loss = loss + (1.0 - jnp.mean(cos)) * cos_simi_scale
    return loss, logits


if __name__ == "__main__":
    key = jax.random.PRNGKey(0)
    k1, k2, k3, k4, k5, k6 = jax.random.split(key, 6)

    # Case 1: single full block (grid == 1).
    N1, D1 = 8, 32
    rna1 = jax.random.normal(k1, (N1, D1), dtype=jnp.float32)
    atac1 = jax.random.normal(k2, (N1, D1), dtype=jnp.float32)
    loss1, logits1 = clip_loss_forward(rna1, atac1)
    jax.block_until_ready((loss1, logits1))
    ref_loss1, ref_logits1 = _reference(rna1, atac1)
    assert jnp.allclose(loss1, ref_loss1, rtol=1e-4, atol=1e-4), (loss1, ref_loss1)
    assert jnp.allclose(logits1, ref_logits1, rtol=1e-4, atol=1e-3)

    # Case 2: two row blocks -> exercises the streaming column-logsumexp path.
    N2, D2 = 16, 32
    rna2 = jax.random.normal(k3, (N2, D2), dtype=jnp.float32)
    atac2 = jax.random.normal(k4, (N2, D2), dtype=jnp.float32)
    loss2, logits2 = clip_loss_forward(rna2, atac2, block_rows=8)
    jax.block_until_ready((loss2, logits2))
    ref_loss2, ref_logits2 = _reference(rna2, atac2)
    assert jnp.allclose(loss2, ref_loss2, rtol=1e-4, atol=1e-4), (loss2, ref_loss2)
    assert jnp.allclose(logits2, ref_logits2, rtol=1e-4, atol=1e-3)

    # Case 3: four row blocks, larger batch (online-softmax rescales kick in).
    N3, D3 = 64, 32
    rna3 = jax.random.normal(k5, (N3, D3), dtype=jnp.float32)
    atac3 = jax.random.normal(k6, (N3, D3), dtype=jnp.float32)
    loss3, logits3 = clip_loss_forward(rna3, atac3, block_rows=16)
    jax.block_until_ready((loss3, logits3))
    ref_loss3, ref_logits3 = _reference(rna3, atac3)
    assert jnp.allclose(loss3, ref_loss3, rtol=1e-3, atol=1e-3), (loss3, ref_loss3)
    assert jnp.allclose(logits3, ref_logits3, rtol=1e-3, atol=1e-2)

    print("KERNEL_OK")
</pallas_src>

<mosaic_0001>
module attributes {stable_mosaic.version = 11 : i64} {
  func.func @_clip_loss_kernel(%arg0: i32, %arg1: memref<8x32xf32, #tpu.memory_space<any>>, %arg2: memref<8x32xf32, #tpu.memory_space<vmem>>, %arg3: memref<8x8xf32, #tpu.memory_space<vmem>>, %arg4: memref<1x1xf32, #tpu.memory_space<vmem>>, %arg5: memref<8x32xf32, #tpu.memory_space<vmem>>, %arg6: memref<1x8xf32, #tpu.memory_space<vmem>>, %arg7: memref<1x8xf32, #tpu.memory_space<vmem>>, %arg8: memref<1x1xf32, #tpu.memory_space<vmem>>, %arg9: memref<1x1xf32, #tpu.memory_space<vmem>>, %arg10: memref<1x1xf32, #tpu.memory_space<vmem>>, %arg11: memref<!tpu.dma_semaphore, #tpu.memory_space<semaphore_mem>>) attributes {dimension_semantics = [#tpu.dimension_semantics<arbitrary>], iteration_bounds = array<i64: 1>, scalar_prefetch = 0 : i64, scratch_operands = 7 : i64, tpu.core_type = #tpu.core_type<tc>, window_params = [{}, {transform_indices = @transform_1, window_bounds = array<i64: 8, 32>}, {transform_indices = @transform_2, window_bounds = array<i64: 8, 8>}, {pipeline_mode = #tpu.pipeline_mode<synchronous>, transform_indices = @transform_3, window_bounds = array<i64: 1, 1>}]} {
    %c0_i32 = arith.constant 0 : i32
    %0 = arith.cmpi eq, %arg0, %c0_i32 : i32
    %1 = arith.extui %0 : i1 to i32
    %c0_i32_0 = arith.constant 0 : i32
    %2 = arith.cmpi ne, %1, %c0_i32_0 : i32
    scf.if %2 {
      tpu.enqueue_dma source(%arg1 : memref<8x32xf32, #tpu.memory_space<any>>) target(%arg5 : memref<8x32xf32, #tpu.memory_space<vmem>>) target_semaphore(%arg11 : memref<!tpu.dma_semaphore, #tpu.memory_space<semaphore_mem>>)
      %cst_45 = arith.constant 0xFF800000 : f32
      %85 = vector.broadcast %cst_45 : f32 to vector<1x8xf32>
      %c0_46 = arith.constant 0 : index
      %c0_47 = arith.constant 0 : index
      %86 = vector.load %arg6[%c0_46, %c0_47] : memref<1x8xf32, #tpu.memory_space<vmem>>, vector<1x8xf32>
      tpu.vector_store %arg6[%c0_46, %c0_47], %85 {strides = array<i32>} : memref<1x8xf32, #tpu.memory_space<vmem>>, vector<1x8xf32>,
      %cst_48 = arith.constant 0.000000e+00 : f32
      %87 = vector.broadcast %cst_48 : f32 to vector<1x8xf32>
      %c0_49 = arith.constant 0 : index
      %c0_50 = arith.constant 0 : index
      %88 = vector.load %arg7[%c0_49, %c0_50] : memref<1x8xf32, #tpu.memory_space<vmem>>, vector<1x8xf32>
      tpu.vector_store %arg7[%c0_49, %c0_50], %87 {strides = array<i32>} : memref<1x8xf32, #tpu.memory_space<vmem>>, vector<1x8xf32>,
      %cst_51 = arith.constant 0.000000e+00 : f32
      %89 = vector.broadcast %cst_51 : f32 to vector<1x1xf32>
      %c0_52 = arith.constant 0 : index
      %c0_53 = arith.constant 0 : index
      %90 = vector.load %arg8[%c0_52, %c0_53] : memref<1x1xf32, #tpu.memory_space<vmem>>, vector<1x1xf32>
      tpu.vector_store %arg8[%c0_52, %c0_53], %89 {strides = array<i32>} : memref<1x1xf32, #tpu.memory_space<vmem>>, vector<1x1xf32>,
      %cst_54 = arith.constant 0.000000e+00 : f32
      %91 = vector.broadcast %cst_54 : f32 to vector<1x1xf32>
      %c0_55 = arith.constant 0 : index
      %c0_56 = arith.constant 0 : index
      %92 = vector.load %arg9[%c0_55, %c0_56] : memref<1x1xf32, #tpu.memory_space<vmem>>, vector<1x1xf32>
      tpu.vector_store %arg9[%c0_55, %c0_56], %91 {strides = array<i32>} : memref<1x1xf32, #tpu.memory_space<vmem>>, vector<1x1xf32>,
      %cst_57 = arith.constant 0.000000e+00 : f32
      %93 = vector.broadcast %cst_57 : f32 to vector<1x1xf32>
      %c0_58 = arith.constant 0 : index
      %c0_59 = arith.constant 0 : index
      %94 = vector.load %arg10[%c0_58, %c0_59] : memref<1x1xf32, #tpu.memory_space<vmem>>, vector<1x1xf32>
      tpu.vector_store %arg10[%c0_58, %c0_59], %93 {strides = array<i32>} : memref<1x1xf32, #tpu.memory_space<vmem>>, vector<1x1xf32>,
      tpu.wait_dma2 semaphore(%arg11 : memref<!tpu.dma_semaphore, #tpu.memory_space<semaphore_mem>>) src(%arg1 : memref<8x32xf32, #tpu.memory_space<any>>) dst(%arg5 : memref<8x32xf32, #tpu.memory_space<vmem>>)
    } else {
    }
    %c0 = arith.constant 0 : index
    %c0_1 = arith.constant 0 : index
    %3 = vector.load %arg2[%c0, %c0_1] : memref<8x32xf32, #tpu.memory_space<vmem>>, vector<8x32xf32>
    %c0_2 = arith.constant 0 : index
    %c0_3 = arith.constant 0 : index
    %4 = vector.load %arg5[%c0_2, %c0_3] : memref<8x32xf32, #tpu.memory_space<vmem>>, vector<8x32xf32>
    %cst = arith.constant dense<0.000000e+00> : vector<8x8xf32>
    %5 = tpu.matmul %3, %4, %cst {dimension_numbers = #tpu.dot_dimension_numbers<[1], [1], [0], [0], [0, 0, 1, 0], [], []>} : vector<8x32xf32>, vector<8x32xf32>, vector<8x8xf32> -> vector<8x8xf32>
    %cst_4 = arith.constant 14.2848568 : f32
    %6 = vector.broadcast %cst_4 : f32 to vector<8x8xf32>
    %7 = arith.mulf %5, %6 : vector<8x8xf32>
    %c0_5 = arith.constant 0 : index
    %c0_6 = arith.constant 0 : index
    %8 = vector.load %arg3[%c0_5, %c0_6] : memref<8x8xf32, #tpu.memory_space<vmem>>, vector<8x8xf32>
    tpu.vector_store %arg3[%c0_5, %c0_6], %7 {strides = array<i32>} : memref<8x8xf32, #tpu.memory_space<vmem>>, vector<8x8xf32>,
    %cst_7 = arith.constant dense<0xFF800000> : vector<8xf32>
    %9 = vector.multi_reduction <maximumf>, %7, %cst_7 [1] : vector<8x8xf32> to vector<8xf32>
    %10 = vector.shape_cast %9 : vector<8xf32> to vector<8x1xf32>
    %11 = vector.broadcast %10 : vector<8x1xf32> to vector<8x8xf32>
    %12 = arith.subf %7, %11 : vector<8x8xf32>
    %13 = math.exp %12 : vector<8x8xf32>
    %cst_8 = arith.constant dense<0.000000e+00> : vector<8xf32>
    %14 = vector.multi_reduction <add>, %13, %cst_8 [1] : vector<8x8xf32> to vector<8xf32>
    %15 = vector.shape_cast %14 : vector<8xf32> to vector<8x1xf32>
    %16 = math.log %15 : vector<8x1xf32>
    %17 = arith.addf %10, %16 : vector<8x1xf32>
    %c0_9 = arith.constant 0 : index
    %c0_10 = arith.constant 0 : index
    %18 = vector.load %arg8[%c0_9, %c0_10] : memref<1x1xf32, #tpu.memory_space<vmem>>, vector<1x1xf32>
    %19 = vector.shape_cast %17 : vector<8x1xf32> to vector<1x8x1xf32>
    %cst_11 = arith.constant dense<0.000000e+00> : vector<1xf32>
    %20 = vector.multi_reduction <add>, %19, %cst_11 [1, 2] : vector<1x8x1xf32> to vector<1xf32>
    %21 = vector.shape_cast %20 : vector<1xf32> to vector<1x1x1xf32>
    %22 = vector.extract %21[0, 0, 0] : f32 from vector<1x1x1xf32>
    %23 = vector.broadcast %22 : f32 to vector<1x1xf32>
    %24 = arith.addf %18, %23 : vector<1x1xf32>
    %c0_12 = arith.constant 0 : index
    %c0_13 = arith.constant 0 : index
    %25 = vector.load %arg8[%c0_12, %c0_13] : memref<1x1xf32, #tpu.memory_space<vmem>>, vector<1x1xf32>
    tpu.vector_store %arg8[%c0_12, %c0_13], %24 {strides = array<i32>} : memref<1x1xf32, #tpu.memory_space<vmem>>, vector<1x1xf32>,
    %cst_14 = arith.constant dense<0xFF800000> : vector<8xf32>
    %26 = vector.multi_reduction <maximumf>, %7, %cst_14 [0] : vector<8x8xf32> to vector<8xf32>
    %27 = vector.shape_cast %26 : vector<8xf32> to vector<1x8xf32>
    %c0_15 = arith.constant 0 : index
    %c0_16 = arith.constant 0 : index
    %28 = vector.load %arg6[%c0_15, %c0_16] : memref<1x8xf32, #tpu.memory_space<vmem>>, vector<1x8xf32>
    %29 = arith.maximumf %28, %27 : vector<1x8xf32>
    %c0_17 = arith.constant 0 : index
    %c0_18 = arith.constant 0 : index
    %30 = vector.load %arg7[%c0_17, %c0_18] : memref<1x8xf32, #tpu.memory_space<vmem>>, vector<1x8xf32>
    %c0_19 = arith.constant 0 : index
    %c0_20 = arith.constant 0 : index
    %31 = vector.load %arg6[%c0_19, %c0_20] : memref<1x8xf32, #tpu.memory_space<vmem>>, vector<1x8xf32>
    %32 = arith.subf %31, %29 : vector<1x8xf32>
    %33 = math.exp %32 : vector<1x8xf32>
    %34 = arith.mulf %30, %33 : vector<1x8xf32>
    %35 = vector.broadcast %29 : vector<1x8xf32> to vector<8x8xf32>
    %36 = arith.subf %7, %35 : vector<8x8xf32>
    %37 = math.exp %36 : vector<8x8xf32>
    %cst_21 = arith.constant dense<0.000000e+00> : vector<8xf32>
    %38 = vector.multi_reduction <add>, %37, %cst_21 [0] : vector<8x8xf32> to vector<8xf32>
    %39 = vector.shape_cast %38 : vector<8xf32> to vector<1x8xf32>
    %40 = arith.addf %34, %39 : vector<1x8xf32>
    %c0_22 = arith.constant 0 : index
    %c0_23 = arith.constant 0 : index
    %41 = vector.load %arg7[%c0_22, %c0_23] : memref<1x8xf32, #tpu.memory_space<vmem>>, vector<1x8xf32>
    tpu.vector_store %arg7[%c0_22, %c0_23], %40 {strides = array<i32>} : memref<1x8xf32, #tpu.memory_space<vmem>>, vector<1x8xf32>,
    %c0_24 = arith.constant 0 : index
    %c0_25 = arith.constant 0 : index
    %42 = vector.load %arg6[%c0_24, %c0_25] : memref<1x8xf32, #tpu.memory_space<vmem>>, vector<1x8xf32>
    tpu.vector_store %arg6[%c0_24, %c0_25], %29 {strides = array<i32>} : memref<1x8xf32, #tpu.memory_space<vmem>>, vector<1x8xf32>,
    %c8_i32 = arith.constant 8 : i32
    %43 = arith.muli %arg0, %c8_i32 : i32
    %44 = tpu.assume_multiple %43, 8 : i32
    %45 = arith.index_cast %44 : i32 to index
    %c0_26 = arith.constant 0 : index
    %46 = vector.load %arg5[%45, %c0_26] : memref<8x32xf32, #tpu.memory_space<vmem>>, vector<8x32xf32>
    %47 = arith.mulf %46, %3 : vector<8x32xf32>
    %cst_27 = arith.constant dense<0.000000e+00> : vector<8xf32>
    %48 = vector.multi_reduction <add>, %47, %cst_27 [1] : vector<8x32xf32> to vector<8xf32>
    %49 = vector.shape_cast %48 : vector<8xf32> to vector<8x1xf32>
    %c0_28 = arith.constant 0 : index
    %c0_29 = arith.constant 0 : index
    %50 = vector.load %arg9[%c0_28, %c0_29] : memref<1x1xf32, #tpu.memory_space<vmem>>, vector<1x1xf32>
    %51 = vector.shape_cast %49 : vector<8x1xf32> to vector<1x8x1xf32>
    %cst_30 = arith.constant dense<0.000000e+00> : vector<1xf32>
    %52 = vector.multi_reduction <add>, %51, %cst_30 [1, 2] : vector<1x8x1xf32> to vector<1xf32>
    %53 = vector.shape_cast %52 : vector<1xf32> to vector<1x1x1xf32>
    %54 = vector.extract %53[0, 0, 0] : f32 from vector<1x1x1xf32>
    %55 = vector.broadcast %54 : f32 to vector<1x1xf32>
    %cst_31 = arith.constant 14.2848568 : f32
    %56 = vector.broadcast %cst_31 : f32 to vector<1x1xf32>
    %57 = arith.mulf %55, %56 : vector<1x1xf32>
    %58 = arith.addf %50, %57 : vector<1x1xf32>
    %c0_32 = arith.constant 0 : index
    %c0_33 = arith.constant 0 : index
    %59 = vector.load %arg9[%c0_32, %c0_33] : memref<1x1xf32, #tpu.memory_space<vmem>>, vector<1x1xf32>
    tpu.vector_store %arg9[%c0_32, %c0_33], %58 {strides = array<i32>} : memref<1x1xf32, #tpu.memory_space<vmem>>, vector<1x1xf32>,
    %60 = arith.mulf %46, %46 : vector<8x32xf32>
    %cst_34 = arith.constant dense<0.000000e+00> : vector<8xf32>
    %61 = vector.multi_reduction <add>, %60, %cst_34 [1] : vector<8x32xf32> to vector<8xf32>
    %62 = vector.shape_cast %61 : vector<8xf32> to vector<8x1xf32>
    %63 = arith.mulf %3, %3 : vector<8x32xf32>
    %cst_35 = arith.constant dense<0.000000e+00> : vector<8xf32>
    %64 = vector.multi_reduction <add>, %63, %cst_35 [1] : vector<8x32xf32> to vector<8xf32>
    %65 = vector.shape_cast %64 : vector<8xf32> to vector<8x1xf32>
    %cst_36 = arith.constant 9.99999996E-13 : f32
    %66 = vector.broadcast %cst_36 : f32 to vector<8x1xf32>
    %67 = arith.maximumf %62, %66 : vector<8x1xf32>
    %68 = math.rsqrt %67 : vector<8x1xf32>
    %69 = arith.mulf %49, %68 : vector<8x1xf32>
    %cst_37 = arith.constant 9.99999996E-13 : f32
    %70 = vector.broadcast %cst_37 : f32 to vector<8x1xf32>
    %71 = arith.maximumf %65, %70 : vector<8x1xf32>
    %72 = math.rsqrt %71 : vector<8x1xf32>
    %73 = arith.mulf %69, %72 : vector<8x1xf32>
    %c0_38 = arith.constant 0 : index
    %c0_39 = arith.constant 0 : index
    %74 = vector.load %arg10[%c0_38, %c0_39] : memref<1x1xf32, #tpu.memory_space<vmem>>, vector<1x1xf32>
    %75 = vector.shape_cast %73 : vector<8x1xf32> to vector<1x8x1xf32>
    %cst_40 = arith.constant dense<0.000000e+00> : vector<1xf32>
    %76 = vector.multi_reduction <add>, %75, %cst_40 [1, 2] : vector<1x8x1xf32> to vector<1xf32>
    %77 = vector.shape_cast %76 : vector<1xf32> to vector<1x1x1xf32>
    %78 = vector.extract %77[0, 0, 0] : f32 from vector<1x1x1xf32>
    %79 = vector.broadcast %78 : f32 to vector<1x1xf32>
    %80 = arith.addf %74, %79 : vector<1x1xf32>
    %c0_41 = arith.constant 0 : index
    %c0_42 = arith.constant 0 : index
    %81 = vector.load %arg10[%c0_41, %c0_42] : memref<1x1xf32, #tpu.memory_space<vmem>>, vector<1x1xf32>
    tpu.vector_store %arg10[%c0_41, %c0_42], %80 {strides = array<i32>} : memref<1x1xf32, #tpu.memory_space<vmem>>, vector<1x1xf32>,
    %c0_i32_43 = arith.constant 0 : i32
    %82 = arith.cmpi eq, %arg0, %c0_i32_43 : i32
    %83 = arith.extui %82 : i1 to i32
    %c0_i32_44 = arith.constant 0 : i32
    %84 = arith.cmpi ne, %83, %c0_i32_44 : i32
    scf.if %84 {
      %c0_45 = arith.constant 0 : index
      %c0_46 = arith.constant 0 : index
      %85 = vector.load %arg6[%c0_45, %c0_46] : memref<1x8xf32, #tpu.memory_space<vmem>>, vector<1x8xf32>
      %c0_47 = arith.constant 0 : index
      %c0_48 = arith.constant 0 : index
      %86 = vector.load %arg7[%c0_47, %c0_48] : memref<1x8xf32, #tpu.memory_space<vmem>>, vector<1x8xf32>
      %87 = math.log %86 : vector<1x8xf32>
      %88 = arith.addf %85, %87 : vector<1x8xf32>
      %c0_49 = arith.constant 0 : index
      %c0_50 = arith.constant 0 : index
      %89 = vector.load %arg8[%c0_49, %c0_50] : memref<1x1xf32, #tpu.memory_space<vmem>>, vector<1x1xf32>
      %c0_51 = arith.constant 0 : index
      %c0_52 = arith.constant 0 : index
      %90 = vector.load %arg9[%c0_51, %c0_52] : memref<1x1xf32, #tpu.memory_space<vmem>>, vector<1x1xf32>
      %91 = arith.subf %89, %90 : vector<1x1xf32>
      %cst_53 = arith.constant 1.250000e-01 : f32
      %92 = vector.broadcast %cst_53 : f32 to vector<1x1xf32>
      %93 = arith.mulf %91, %92 : vector<1x1xf32>
      %94 = vector.shape_cast %88 : vector<1x8xf32> to vector<1x1x8xf32>
      %cst_54 = arith.constant dense<0.000000e+00> : vector<1xf32>
      %95 = vector.multi_reduction <add>, %94, %cst_54 [1, 2] : vector<1x1x8xf32> to vector<1xf32>
      %96 = vector.shape_cast %95 : vector<1xf32> to vector<1x1x1xf32>
      %97 = vector.extract %96[0, 0, 0] : f32 from vector<1x1x1xf32>
      %98 = vector.broadcast %97 : f32 to vector<1x1xf32>
      %c0_55 = arith.constant 0 : index
      %c0_56 = arith.constant 0 : index
      %99 = vector.load %arg9[%c0_55, %c0_56] : memref<1x1xf32, #tpu.memory_space<vmem>>, vector<1x1xf32>
      %100 = arith.subf %98, %99 : vector<1x1xf32>
      %cst_57 = arith.constant 1.250000e-01 : f32
      %101 = vector.broadcast %cst_57 : f32 to vector<1x1xf32>
      %102 = arith.mulf %100, %101 : vector<1x1xf32>
      %c0_58 = arith.constant 0 : index
      %c0_59 = arith.constant 0 : index
      %103 = vector.load %arg10[%c0_58, %c0_59] : memref<1x1xf32, #tpu.memory_space<vmem>>, vector<1x1xf32>
      %cst_60 = arith.constant 1.250000e-01 : f32
      %104 = vector.broadcast %cst_60 : f32 to vector<1x1xf32>
      %105 = arith.mulf %103, %104 : vector<1x1xf32>
      %106 = arith.addf %93, %102 : vector<1x1xf32>
      %cst_61 = arith.constant 5.000000e-01 : f32
      %107 = vector.broadcast %cst_61 : f32 to vector<1x1xf32>
      %108 = arith.mulf %106, %107 : vector<1x1xf32>
      %cst_62 = arith.constant 1.000000e+00 : f32
      %109 = vector.broadcast %cst_62 : f32 to vector<1x1xf32>
      %110 = arith.subf %109, %105 : vector<1x1xf32>
      %cst_63 = arith.constant 1.000000e+00 : f32
      %111 = vector.broadcast %cst_63 : f32 to vector<1x1xf32>
      %112 = arith.mulf %110, %111 : vector<1x1xf32>
      %113 = arith.addf %108, %112 : vector<1x1xf32>
      %c0_64 = arith.constant 0 : index
      %c0_65 = arith.constant 0 : index
      %114 = vector.load %arg4[%c0_64, %c0_65] : memref<1x1xf32, #tpu.memory_space<vmem>>, vector<1x1xf32>
      tpu.vector_store %arg4[%c0_64, %c0_65], %113 {strides = array<i32>} : memref<1x1xf32, #tpu.memory_space<vmem>>, vector<1x1xf32>,
    } else {
    }
    return
  }
  func.func @transform_1(%arg0: i32) -> (i32, i32) {
    %c0_i32 = arith.constant 0 : i32
    %c0_i32_0 = arith.constant 0 : i32
    return %arg0, %c0_i32 : i32, i32
  }
  func.func @transform_2(%arg0: i32) -> (i32, i32) {
    %c0_i32 = arith.constant 0 : i32
    %c0_i32_0 = arith.constant 0 : i32
    return %arg0, %c0_i32 : i32, i32
  }
  func.func @transform_3(%arg0: i32) -> (i32, i32) {
    %c0_i32 = arith.constant 0 : i32
    %c0_i32_0 = arith.constant 0 : i32
    %c0_i32_1 = arith.constant 0 : i32
    return %c0_i32, %c0_i32_0 : i32, i32
  }
}

</mosaic_0001>

<bundles_post_ra>
// kernel: tpu_custom_call.1
= control target key start
LH: loop header
LB: loop body
LE: loop exit
PB: predicated region body
PF: predicated region fallthrough
CT: control target
= control target key end

     0   :  { %9 = vsyncpa [#allocation10], 0  ;;  %s544_s0 = inlined_call_operand.hbm [shape: f32[8,32], index: 0, kind: input, shape index: {}]   ;;  %s545_s1 = inlined_call_operand.hbm [shape: f32[8,32], index: 1, kind: input, shape index: {}]   ;;  %s546_s2 = inlined_call_operand.hbm [shape: f32[8,8], index: 2, kind: output, shape index: {0}]   ;;  %s547_s3 = inlined_call_operand.hbm [shape: f32[1,1], index: 3, kind: output, shape index: {1}]  }
   0x1   :  { %10 = vsyncpa [#allocation11], 0 }
   0x2   :  { %11 = vsyncpa [#allocation14], 0  ;;  %s445_s12 = smov [#allocation9]   ;;  %s349_s16 = scalar_lea.hbm %s545_s1, 128 }
   0x3   :  { %s18_s13 = sshll.u32 %s445_s12, 4  ;;  %p350_p0 = scmp.ne.s32.totalorder %s545_s1, %s349_s16  ;;  %s19_s13 = int_to_ptr.vmem [resolvable:$true] %s18_s13 }
   0x4   :  { %p353_p1 = scmp.lt.u32.totalorder %s349_s16, %s545_s1 }
   0x6   :  { %p355_p2 = pnand %p353_p1, %p350_p0 }
   0x8   :  { %358 = shalt.err (!%p355_p2)
}
   0x9   :  { %s359_s21 = scalar_lea.vmem %s19_s13, 128  ;;  %p364_p4 = scmp.lt.s32.totalorder %s19_s13, %s19_s13 }
   0xa   :  { %p360_p3 = scmp.ne.s32.totalorder %s19_s13, %s359_s21  ;;  %p365_p5 = scmp.lt.s32.totalorder %s359_s21, %s359_s21 }
   0xc   :  { %p366_p6 = por %p365_p5, %p364_p4 }
   0xe   :  { %p367_p7 = pnand %p366_p6, %p360_p3 }
  0x10   :  { %370 = shalt.err (!%p367_p7)
}
  0x11   :  { %21 = dma.hbm_to_vmem [thread:$0]  %s545_s1, 128, %s19_s13, [#allocation10]  }
  0x12   :  { %437 = dma.done.wait [#allocation10], 128  }
  0x13   :  { %438 = vsyncadd [#allocation10], 4294967168  ;;  %vm40_vm0 = vcmask 57344   ;;  %s446_s24 = smov [#allocation2]   ;;  %v447_v0 = vmov -inf   ;;  %v448_v1 = vmov 0.0  }
  0x14   :  { %s36_s25 = sshll.u32 %s446_s24, 4  ;;  %41 = vst.msk [vmem:[#allocation3] sm:$0x1] %vm40_vm0, %v447_v0  ;;  %42 = vst.msk [vmem:[#allocation4] sm:$0x1] %vm40_vm0, %v448_v1  ;;  %vm43_vm1 = vcmask 0   ;;  %s37_s25 = int_to_ptr.vmem [resolvable:$true] %s36_s25 }
  0x15   :  { %44 = vst.msk [vmem:[#allocation5] sm:$0x1] %vm43_vm1, %v448_v1  ;;  %45 = vst.msk [vmem:[#allocation6] sm:$0x1] %vm43_vm1, %v448_v1  ;;  %s371_s27 = scalar_lea.hbm %s544_s0, 128 }
  0x16   :  { %46 = vst.msk [vmem:[#allocation7] sm:$0x1] %vm43_vm1, %v448_v1  ;;  %p372_p8 = scmp.ne.s32.totalorder %s544_s0, %s371_s27  ;;  %p375_p9 = scmp.lt.u32.totalorder %s371_s27, %s544_s0 }
  0x18   :  { %p377_p10 = pnand %p375_p9, %p372_p8 }
  0x1a   :  { %380 = shalt.err (!%p377_p10)  }
  0x1b   :  { %s381_s5 = scalar_lea.vmem %s37_s25, 128  ;;  %p386_p12 = scmp.lt.s32.totalorder %s37_s25, %s37_s25 }
  0x1c   :  { %p382_p11 = scmp.ne.s32.totalorder %s37_s25, %s381_s5  ;;  %p387_p13 = scmp.lt.s32.totalorder %s381_s5, %s381_s5 }
  0x1e   :  { %p388_p0 = por %p387_p13, %p386_p12 }
  0x20   :  { %p389_p1 = pnand %p388_p0, %p382_p11 }
  0x22   :  { %392 = shalt.err (!%p389_p1)  }
  0x23   :  { %39 = dma.hbm_to_vmem [thread:$0]  %s544_s0, 128, %s37_s25, [#allocation8] }
  0x24   :  { %439 = dma.done.wait [#allocation8], 128 }
  0x25   :  { %440 = vsyncadd [#allocation8], 4294967168  ;;  %315 = vmatprep.subr.mxu0 %v448_v1  ;;  %vm449_vm2 = vmmov 0   ;;  %vm52_vm3 = vcmask 261120   ;;  %v51_v2 = vld [vmem:[#allocation2] sm:$0xff]  ;;  %v50_v3 = vld [vmem:[#allocation9] sm:$0xff]  ;;  %v174_v9 = vlaneseq }
  0x26   :  { %317 = vmatprep.mubr.msk.f32.mxu0 %vm449_vm2, %v448_v1  ;;  %316 = vmatpush3.xpose.msk.msra.mxu0 %vm52_vm3, %v51_v2  ;;  %vm130_vm4 = vcmask 64512   ;;  %v166_v15 = vld [vmem:[#allocation3] sm:$0x1]  ;;  %v215_v22 = vmul.f32 %v51_v2, %v51_v2  ;;  %v219_v27 = vmul.f32 %v50_v3, %v50_v3  ;;  %v168_v35 = vld [vmem:[#allocation4] sm:$0x1]  ;;  %v196_v43 = vmul.f32 %v51_v2, %v50_v3  ;;  %s450_s0 = smov [#allocation12]  }
  0x27   :  { %v175_v12 = vshrl.u32 %v174_v9, 7  ;;  %vm145_vm5 = vcmask 7168   ;;  %s281_s8 = sshll.u32 %s450_s0, 4  ;;  %s282_s8 = int_to_ptr.vmem [resolvable:$true] %s281_s8 }
  0x28   :  { %v216_v23 = vsel %vm52_vm3, %v215_v22, 0.0  ;;  %v220_v30 = vsel %vm52_vm3, %v219_v27, 0.0  ;;  %v197_v46 = vsel %vm52_vm3, %v196_v43, 0.0  ;;  %s393_s9 = scalar_lea.vmem %s282_s8, 128  ;;  %p398_p3 = scmp.lt.s32.totalorder %s282_s8, %s282_s8 }
  0x29   :  { %318 = vmatmul.mubr.msk.f32.vlgmr.msra.gmra.mrb[0].mxu0 %vm52_vm3, %v50_v3  ;;  %v176_v16 = vsub.s32 0, %v175_v12  ;;  %217 = vadd.xlane.f32.xlu1 %v216_v23  ;;  %p394_p2 = scmp.ne.s32.totalorder %s282_s8, %s393_s9  ;;  %p399_p4 = scmp.lt.s32.totalorder %s393_s9, %s393_s9 }
  0x2b   :  { %p400_p5 = por %p399_p4, %p398_p3 }
  0x2d   :  { %221 = vadd.xlane.f32.xlu1 %v220_v30  ;;  %p401_p6 = pnand %p400_p5, %p394_p2 }
  0xb6   :  { %v218_v48 = vpop.xlane.xlu1 %217 }
  0xb7   :  { %v223_v49 = vmax.f32 %v218_v48, 1e-12 }
  0xba   :  { %v222_v50 = vpop.xlane.xlu1 %221 }
  0xbb   :  { %v226_v51 = vmax.f32 %v222_v50, 1e-12 }
  0xfc   :  { %v125_v4 = vpop.f32.mrb[0].mxu0 }
  0xfd   :  { %v129_v5 = vmul.f32 14.284857, %v125_v4  ;;  %v319_v6 = vpop.f32.mrb[1].mxu0 }
  0xff   :  { %v132_v7 = vsel %vm130_vm4, %v129_v5, -inf  ;;  %131 = vst.msk [vmem:[#allocation12] sm:$0xff] %vm130_vm4, %v129_v5 }
 0x100   :  { %133 = vmax.xlane.f32.xlu0 %v132_v7  ;;  %v160_v8 = vrot.slane %v132_v7, 4 }
 0x102   :  { %v161_v10 = vmax.f32 %v132_v7, %v160_v8 }
 0x104   :  { %v162_v11 = vrot.slane %v161_v10, 2 }
 0x106   :  { %v163_v13 = vmax.f32 %v161_v10, %v162_v11 }
 0x108   :  { %v164_v14 = vrot.slane %v163_v13, 1 }
 0x10a   :  { %v165_v17 = vmax.f32 %v163_v13, %v164_v14 }
 0x10c   :  { %v167_v18 = vmax.f32 %v166_v15, %v165_v17 }
 0x10e   :  { %v177_v19 = vrot.slane %v167_v18, %v176_v16  ;;  %192 = vst.msk [vmem:[#allocation3] sm:$0x1] %vm40_vm0, %v167_v18  ;;  %v169_v24 = vsub.f32 %v166_v15, %v167_v18 }
 0x110   :  { %v179_v20 = vsub.f32 %v129_v5, %v177_v19  ;;  %v170_v25 = vmul.f32 1.442695, %v169_v24 }
 0x112   :  { %v180_v21 = vmul.f32 1.442695, %v179_v20 }
 0x114   :  { %335 = vpow2.f32 %v180_v21 }
 0x115   :  { %337 = vpow2.f32 %v170_v25  ;;  %v246_v56 = vld [vmem:[#allocation3] sm:$0x1] }
 0x11e   :  { %v336_v26 = vpop.eup %335 }
 0x11f   :  { %v182_v28 = vsel %vm130_vm4, %v336_v26, 0.0  ;;  %v338_v34 = vpop.eup %337 }
 0x120   :  { %v183_v29 = vrot.slane %v182_v28, 4  ;;  %v172_v37 = vmul.f32 %v338_v34, %v168_v35 }
 0x122   :  { %v184_v31 = vadd.f32 %v183_v29, %v182_v28 }
 0x124   :  { %v185_v32 = vrot.slane %v184_v31, 2 }
 0x126   :  { %v186_v33 = vadd.f32 %v185_v32, %v184_v31 }
 0x128   :  { %v187_v36 = vrot.slane %v186_v33, 1 }
 0x12a   :  { %v188_v38 = vadd.f32 %v187_v36, %v186_v33 }
 0x12c   :  { %v189_v39 = vadd.f32 %v188_v38, %v172_v37 }
 0x12e   :  { %191 = vst.msk [vmem:[#allocation4] sm:$0x1] %vm40_vm0, %v189_v39 }
 0x135   :  { %v247_v47 = vld [vmem:[#allocation4] sm:$0x1] }
 0x18d   :  { %v134_v40 = vpop.xlane.xlu0 %133 }
 0x18e   :  { %v135_v41 = vsub.f32 %v129_v5, %v134_v40 }
 0x190   :  { %v136_v42 = vmul.f32 1.442695, %v135_v41 }
 0x192   :  { %339 = vpow2.f32 %v136_v42 }
 0x193   :  { %341 = vlog2.f32 %v247_v47 }
 0x194   :  { %343 = vrsqrt.f32 %v223_v49 }
 0x195   :  { %345 = vrsqrt.f32 %v226_v51 }
 0x19c   :  { %v340_v44 = vpop.eup %339 }
 0x19d   :  { %v138_v45 = vsel %vm130_vm4, %v340_v44, 0.0  ;;  %v342_v52 = vpop.eup %341 }
 0x19e   :  { %139 = vadd.xlane.f32.xlu0 %v138_v45  ;;  %v249_v54 = vmul.f32 0.6931472, %v342_v52  ;;  %v344_v59 = vpop.eup %343 }
 0x19f   :  { %v346_v61 = vpop.eup %345 }
 0x1a0   :  { %v250_v58 = vadd.f32 %v249_v54, %v246_v56 }
 0x1a2   :  { %198 = vadd.xlane.f32.xlu0 %v197_v46  ;;  %v255_v60 = vsel %vm40_vm0, %v250_v58, 0.0 }
 0x22b   :  { %v140_v53 = vpop.xlane.xlu0 %139 }
 0x22c   :  { %347 = vlog2.f32 %v140_v53 }
 0x22f   :  { %v199_v55 = vpop.xlane.xlu0 %198 }
 0x230   :  { %v201_v57 = vsel %vm145_vm5, %v199_v55, 0.0  ;;  %v225_v62 = vmul.f32 %v344_v59, %v199_v55 }
 0x231   :  { %202 = vadd.xlane.f32.xlu0 %v201_v57 }
 0x232   :  { %v228_v2 = vmul.f32 %v346_v61, %v225_v62 }
 0x234   :  { %v230_v4 = vsel %vm145_vm5, %v228_v2, 0.0 }
 0x235   :  { %256 = vadd.xlane.f32.xlu0 %v255_v60 }
 0x236   :  { %v348_v63 = vpop.eup %347 }
 0x237   :  { %v142_v0 = vmul.f32 0.6931472, %v348_v63 }
 0x239   :  { %v143_v1 = vadd.f32 %v142_v0, %v134_v40 }
 0x23b   :  { %v146_v3 = vsel %vm145_vm5, %v143_v1, 0.0 }
 0x23c   :  { %147 = vadd.xlane.f32.xlu1 %v146_v3 }
 0x240   :  { %231 = vadd.xlane.f32.xlu1 %v230_v4 }
 0x241   :  { %404 = shalt.err (!%p401_p6)
}
 0x242   :  { %s405_s12 = scalar_lea.hbm %s546_s2, 128 }
 0x243   :  { %p406_p7 = scmp.ne.s32.totalorder %s546_s2, %s405_s12  ;;  %p409_p8 = scmp.lt.u32.totalorder %s405_s12, %s546_s2 }
 0x245   :  { %p411_p9 = pnand %p409_p8, %p406_p7 }
 0x247   :  { %414 = shalt.err (!%p411_p9)
}
 0x248   :  { %284 = dma.vmem_to_hbm [thread:$0]  %s282_s8, 128, %s546_s2, [#allocation11]   ;;  %v144_v33 = vld [vmem:[#allocation5] sm:$0x1]  ;;  %v200_v36 = vld [vmem:[#allocation6] sm:$0x1] }
 0x249   :  { %v229_v39 = vld [vmem:[#allocation7] sm:$0x1]  ;;  %s451_s22 = smov [#allocation13]  }
 0x24a   :  { %s291_s23 = sshll.u32 %s451_s22, 4  ;;  %s292_s23 = int_to_ptr.vmem [resolvable:$true] %s291_s23 }
 0x24b   :  { %s415_s24 = scalar_lea.vmem %s292_s23, 16  ;;  %s419_s25 = scalar_lea.vmem %s292_s23, 32 }
 0x24c   :  { %p416_p10 = scmp.ne.s32.totalorder %s292_s23, %s415_s24  ;;  %p420_p11 = scmp.lt.s32.totalorder %s292_s23, %s292_s23 }
 0x24d   :  { %p421_p12 = scmp.lt.s32.totalorder %s419_s25, %s415_s24 }
 0x24f   :  { %p422_p13 = por %p421_p12, %p420_p11 }
 0x251   :  { %p423_p0 = pnand %p422_p13, %p416_p10 }
 0x2be   :  { %v203_v5 = vpop.xlane.xlu0 %202 }
 0x2bf   :  { %v204_v6 = vrot.slane %v203_v5, 4 }
 0x2c1   :  { %v205_v8 = vadd.f32 %v204_v6, %v203_v5 }
 0x2c2   :  { %v257_v7 = vpop.xlane.xlu0 %256 }
 0x2c3   :  { %v258_v9 = vrot.slane %v257_v7, 4  ;;  %v206_v10 = vrot.slane %v205_v8, 2 }
 0x2c5   :  { %v259_v11 = vadd.f32 %v258_v9, %v257_v7  ;;  %v207_v17 = vadd.f32 %v206_v10, %v205_v8 }
 0x2c7   :  { %v260_v15 = vrot.slane %v259_v11, 2  ;;  %v208_v23 = vrot.slane %v207_v17, 1 }
 0x2c9   :  { %v148_v12 = vpop.xlane.xlu1 %147  ;;  %v261_v22 = vadd.f32 %v260_v15, %v259_v11  ;;  %v209_v28 = vadd.f32 %v208_v23, %v207_v17 }
 0x2ca   :  { %v149_v13 = vrot.slane %v148_v12, 4 }
 0x2cb   :  { %v262_v29 = vrot.slane %v261_v22, 1 }
 0x2cc   :  { %v150_v14 = vadd.f32 %v149_v13, %v148_v12 }
 0x2cd   :  { %v232_v16 = vpop.xlane.xlu1 %231  ;;  %v263_v32 = vadd.f32 %v262_v29, %v261_v22 }
 0x2ce   :  { %v151_v18 = vrot.slane %v150_v14, 2  ;;  %v233_v19 = vrot.slane %v232_v16, 4 }
 0x2d0   :  { %v234_v20 = vadd.f32 %v233_v19, %v232_v16  ;;  %v152_v21 = vadd.f32 %v151_v18, %v150_v14 }
 0x2d2   :  { %v235_v24 = vrot.slane %v234_v20, 2  ;;  %v153_v25 = vrot.slane %v152_v21, 1 }
 0x2d4   :  { %v236_v26 = vadd.f32 %v235_v24, %v234_v20  ;;  %v154_v27 = vadd.f32 %v153_v25, %v152_v21 }
 0x2d6   :  { %320 = vpush %v154_v27  ;;  %v237_v30 = vrot.slane %v236_v26, 1 }
 0x2d7   :  { %322 = vpush %v209_v28 }
 0x2d8   :  { %v238_v31 = vadd.f32 %v237_v30, %v236_v26 }
 0x2da   :  { %324 = vpush %v238_v31 }
 0x2db   :  { %326 = vpush %v263_v32 }
 0x307   :  { %s321_s2 = spop %320 }
 0x308   :  { %v156_v34 = vstv %s321_s2  ;;  %s323_s19 = spop %322 }
 0x309   :  { %v157_v35 = vadd.f32 %v156_v34, %v144_v33  ;;  %v211_v37 = vstv %s323_s19 }
 0x30a   :  { %v212_v38 = vmul.f32 14.284857, %v211_v37 }
 0x30b   :  { %159 = vst.msk [vmem:[#allocation5] sm:$0x1] %vm43_vm1, %v157_v35  ;;  %s325_s20 = spop %324 }
 0x30c   :  { %v213_v40 = vadd.f32 %v212_v38, %v200_v36  ;;  %v240_v41 = vstv %s325_s20  ;;  %s327_s21 = spop %326 }
 0x30d   :  { %v241_v42 = vadd.f32 %v240_v41, %v229_v39  ;;  %v265_v45 = vstv %s327_s21 }
 0x30e   :  { %214 = vst.msk [vmem:[#allocation6] sm:$0x1] %vm43_vm1, %v213_v40 }
 0x30f   :  { %242 = vst.msk [vmem:[#allocation7] sm:$0x1] %vm43_vm1, %v241_v42 }
 0x312   :  { %v251_v43 = vld [vmem:[#allocation5] sm:$0x1] }
 0x315   :  { %v252_v44 = vld [vmem:[#allocation6] sm:$0x1] }
 0x316   :  { %v253_v46 = vsub.f32 %v251_v43, %v252_v44  ;;  %v266_v47 = vsub.f32 %v265_v45, %v252_v44  ;;  %v268_v48 = vld [vmem:[#allocation7] sm:$0x1] }
 0x317   :  { %v269_v51 = vmul.f32 0.125, %v268_v48 }
 0x318   :  { %v254_v49 = vmul.f32 0.125, %v253_v46  ;;  %v267_v50 = vmul.f32 0.125, %v266_v47 }
 0x319   :  { %v272_v54 = vsub.f32 1.0, %v269_v51 }
 0x31a   :  { %v270_v52 = vadd.f32 %v267_v50, %v254_v49 }
 0x31c   :  { %v271_v53 = vmul.f32 0.5, %v270_v52 }
 0x31e   :  { %v273_v55 = vadd.f32 %v272_v54, %v271_v53 }
 0x320   :  { %274 = vst.msk [vmem:[#allocation13] sm:$0x1] %vm43_vm1, %v273_v55 }
 0x321   :  { %426 = shalt.err (!%p423_p0)
}
 0x322   :  { %s427_s27 = scalar_lea.hbm %s547_s3, 16 }
 0x323   :  { %p428_p1 = scmp.ne.s32.totalorder %s547_s3, %s427_s27  ;;  %p431_p2 = scmp.lt.u32.totalorder %s427_s27, %s547_s3 }
 0x325   :  { %p433_p3 = pnand %p431_p2, %p428_p1 }
 0x327   :  { %436 = shalt.err (!%p433_p3)
}
 0x328   :  { %294 = dma.vmem_to_hbm [thread:$0]  %s292_s23, 16, %s547_s3, [#allocation14]  }
 0x329   :  { %441 = dma.done.wait [#allocation11], 128  }
 0x32a   :  { %442 = vsyncadd [#allocation11], 4294967168 }
 0x32b   :  { %443 = dma.done.wait [#allocation14], 16  }
 0x32c   :  { %444 = vsyncadd [#allocation14], 4294967280 }
 0x32d   :  { %301 = vsyncpa [#allocation10], 1 }
 0x32e   :  { %302 = vsyncpa [#allocation11], 1 }
 0x32f   :  { %303 = vsyncpa [#allocation14], 1 }
 0x330   :  { %304 = vsyncmov [#allocation8] }
 0x333   :  { %s305_s7 = vpop.sfrf %304 }
 0x334   :  { %p312_p4 = scmp.ne.s32.totalorder %s305_s7, 0 }
 0x336   :  { %309 = shalt.err (%p312_p4)  }

</bundles_post_ra>
